<compile_context>
chip_gen: v7x
topology: tpu7x:2x2x1
jax: 0.10.0
libtpu: 0.0.40
codegen_flags: <defaults>
</compile_context>

<pallas_src>
import jax
import jax.numpy as jnp
from jax.experimental import pallas as pl
from jax.experimental.pallas import tpu as pltpu

_SMALL_BYTES = 2 * 1024 * 1024   # below this: gridless single-block call
_TARGET_BLOCK_BYTES = 2 << 20    # ~2 MiB/block -> <=8 MiB live with double-buffered in+out


def _identity_copy_kernel(x_ref, o_ref):
    # Single ref-to-ref assignment: DMA in, vreg copy, DMA out.  No extra
    # elementwise work on the VPU.
    o_ref[...] = x_ref[...]


def _lane_dense_slab(total: int):
    """Pick a (rows, lanes) reshape that fills full (8, 128) vregs when possible."""
    for lanes in (512, 256, 128):
        if total % lanes == 0 and (total // lanes) % 8 == 0:
            return total // lanes, lanes
    if total % 128 == 0:
        return total // 128, 128
    return None


def generator_forward(x: jax.Array) -> jax.Array:
    """Forward pass of the (stub) Generator module as a Pallas TPU kernel."""
    total = x.size
    itemsize = jnp.dtype(x.dtype).itemsize
    slab = _lane_dense_slab(total)

    if slab is None:
        # Irregular element count: full-array single block (block_shape equal
        # to the full array dims is always legal); still alias output to input.
        return pl.pallas_call(
            _identity_copy_kernel,
            out_shape=jax.ShapeDtypeStruct(x.shape, x.dtype),
            input_output_aliases={0: 0},
        )(x)

    rows, lanes = slab
    x2 = x.reshape(rows, lanes)  # lane-dense 2D slab (last dim multiple of 128)

    if total * itemsize <= _SMALL_BYTES:
        # Small tensor: gridless call — one lane-dense block, no grid loop.
        out2 = pl.pallas_call(
            _identity_copy_kernel,
            out_shape=jax.ShapeDtypeStruct((rows, lanes), x.dtype),
            input_output_aliases={0: 0},
        )(x2)
    else:
        # Large tensor: tile rows so BlockSpec double-buffering overlaps the
        # read and write DMAs; ~2 MiB blocks keep the per-step overhead
        # (~0.35 us) negligible while staying well under the scoped VMEM
        # limit.  The "parallel" axis lets the grid shard across v7x's two
        # TensorCores.
        row_block = _TARGET_BLOCK_BYTES // (lanes * itemsize)
        row_block = max(8, (row_block // 8) * 8)
        row_block = min(row_block, rows)
        spec = pl.BlockSpec((row_block, lanes), lambda i: (i, 0))
        out2 = pl.pallas_call(
            _identity_copy_kernel,
            out_shape=jax.ShapeDtypeStruct((rows, lanes), x.dtype),
            grid=(pl.cdiv(rows, row_block),),
            in_specs=[spec],
            out_specs=spec,
            input_output_aliases={0: 0},
            compiler_params=pltpu.CompilerParams(
                dimension_semantics=("parallel",),
            ),
        )(x2)

    return out2.reshape(x.shape)


if __name__ == "__main__":
    key = jax.random.PRNGKey(0)
    shape = (2, 4, 16, 16)  # NCHW, consistent with a typical image generator
    x = jax.random.normal(key, shape, dtype=jnp.float32)
    # Identical reference copy (same key/shape/dtype) — `x` itself is donated
    # below so it cannot be reused for the correctness check.
    x_expected = jax.random.normal(key, shape, dtype=jnp.float32)

    # Donate the input so input_output_aliases={0: 0} inside the kernel is a
    # true zero-copy alias (no defensive copy inserted by XLA).
    fwd = jax.jit(generator_forward, donate_argnums=0)
    out = fwd(x)
    jax.block_until_ready(out)

    # Sanity check: pass-through semantics.
    assert out.shape == shape and out.dtype == jnp.float32
    assert bool(jnp.allclose(out, x_expected))

    print("KERNEL_OK")
</pallas_src>

<mosaic_0001>
module attributes {stable_mosaic.version = 11 : i64} {
  func.func @_identity_copy_kernel(%arg0: memref<8x256xf32, #tpu.memory_space<vmem>>, %arg1: memref<8x256xf32, #tpu.memory_space<vmem>>) attributes {dimension_semantics = [], scalar_prefetch = 0 : i64, scratch_operands = 0 : i64, tpu.core_type = #tpu.core_type<tc>} {
    %c0 = arith.constant 0 : index
    %c0_0 = arith.constant 0 : index
    %0 = vector.load %arg0[%c0, %c0_0] : memref<8x256xf32, #tpu.memory_space<vmem>>, vector<8x256xf32>
    %c0_1 = arith.constant 0 : index
    %c0_2 = arith.constant 0 : index
    %1 = vector.load %arg1[%c0_1, %c0_2] : memref<8x256xf32, #tpu.memory_space<vmem>>, vector<8x256xf32>
    tpu.vector_store %arg1[%c0_1, %c0_2], %0 {strides = array<i32>} : memref<8x256xf32, #tpu.memory_space<vmem>>, vector<8x256xf32>,
    return
  }
}

</mosaic_0001>

<bundles_post_ra>
// kernel: generator_forward.1
= control target key start
LH: loop header
LB: loop body
LE: loop exit
PB: predicated region body
PF: predicated region fallthrough
CT: control target
= control target key end

     0   :  { %s38_s0 = inlined_call_operand.vmem [shape: f32[8,256], index: 0, kind: input, shape index: {}, may-alias: {0,1}]   ;;  %s39_s1 = inlined_call_operand.vmem [shape: f32[8,256], index: 1, kind: output, shape index: {}, may-alias: {0,1}]  }
   0x1   :  { %v8_v0 = vld [vmem:[%s38_s0] sm:$0xff]  ;;  %v9_v1 = vld [vmem:[%s38_s0 + $0x8] sm:$0xff] }
   0x2   :  { %10 = vst [vmem:[%s39_s1] sm:$0xff] %v8_v0  ;;  %11 = vst [vmem:[%s39_s1 + $0x8] sm:$0xff] %v9_v1 }

</bundles_post_ra>
